<compile_context>
chip_gen: v7x
topology: tpu7x:2x2x1
jax: 0.10.0
libtpu: 0.0.40
codegen_flags: <defaults>
</compile_context>

<pallas_src>
import functools

import jax
import jax.numpy as jnp
from jax.experimental import pallas as pl
from jax.experimental.pallas import tpu as pltpu


# ----------------------------- Pallas kernel ------------------------------ #

def _fused_kernel(h1, h2, l1, f_in, o2, o3, o4, mm_dtype, gate_dtype,
                  x_ref, w_ref, b_ref, out_ref):
    """Fully fused forward pass, node-on-lanes (transposed) layout.

    x_ref : (f_in, tile_n)  mm_dtype   -- x^T, NO feature-row padding
    w_ref : (rows, kpad)    mm_dtype   -- packed [W1|W2|WL1|WL2] (transposed, x-parts only,
                                          z-gate rows pre-negated host-side)
    b_ref : (rows, 1)       f32        -- packed bias column (z-gate rows pre-negated)
    out   : (1, tile_n)     f32        -- lane-dense output row
    """
    x = x_ref[...]
    w = w_ref[...]
    b = b_ref[...]

    def reduced_cell(g, h_dim):
        # DCRNN cell with H = 0:  z*H + (1-z)*tanh(cand) == (1-z)*tanh(cand).
        # z-gate weights/biases were negated host-side, so sigmoid(g_z) here IS (1-z).
        gg = g.astype(gate_dtype)                        # bf16 VPU/EUP on v6e/v7x
        one_minus_z = jax.nn.sigmoid(gg[:h_dim])
        t = jnp.tanh(gg[h_dim:2 * h_dim])
        # fused with the module's ReLU
        return jnp.maximum(one_minus_z * t, 0.0).astype(mm_dtype)

    # recurrent1 (+ ReLU): one wide matmul for both surviving gates, real K = f_in.
    g1 = jnp.dot(w[0:2 * h1, 0:f_in], x,
                 preferred_element_type=jnp.float32) + b[0:2 * h1]
    a1 = reduced_cell(g1, h1)                            # (h1, tile_n)

    # recurrent2 (+ ReLU)
    g2 = jnp.dot(w[o2:o2 + 2 * h2, 0:h1], a1,
                 preferred_element_type=jnp.float32) + b[o2:o2 + 2 * h2]
    a2 = reduced_cell(g2, h2)                            # (h2, tile_n)

    # Dropout(0.2) is the identity at inference.
    # linear1 (+ ReLU)
    g3 = jnp.dot(w[o3:o3 + l1, 0:h2], a2,
                 preferred_element_type=jnp.float32) + b[o3:o3 + l1]
    a3 = jnp.maximum(g3, 0.0).astype(mm_dtype)           # (l1, tile_n)

    # linear2 -- use the zero-padded 16-row slab (MXU-friendly M), keep row 0.
    g4 = jnp.dot(w[o4:, 0:l1], a3, preferred_element_type=jnp.float32)
    out_ref[...] = g4[0:1, :] + b[o4:o4 + 1]


# --------------------------- Host-side helpers ------------------------------ #

def _round_up(v, m):
    return (v + m - 1) // m * m


def _default_gate_dtype(matmul_dtype):
    """bf16 gate math on v6e/v7x (native bf16 VPU/EUP); f32 on older chips / f32 path."""
    if matmul_dtype == jnp.float32:
        return jnp.float32
    try:
        kind = jax.devices()[0].device_kind.lower()
    except Exception:  # pragma: no cover - defensive
        kind = ""
    if any(tag in kind for tag in ("v2", "v3", "v4", "v5")):
        return jnp.float32          # no bf16 VPU/EUP pre-v6: bf16 would only add casts
    return jnp.bfloat16


def pack_params(params, matmul_dtype=jnp.bfloat16):
    """One-time packing of all weights into a single blob + a single bias column.

    Done at load time (NOT per forward call): pre-split x-parts, pre-transpose, fuse the
    two surviving gates per DCRNN layer into one wide matmul, pre-negate the z-gate rows
    (so the kernel computes (1-z) directly via sigmoid), 16-row-align every slab, cast.
    """
    h1 = params["w1z"].shape[1]
    h2 = params["w2z"].shape[1]
    l1 = params["wl1"].shape[1]       # 16
    out_dim = params["wl2"].shape[1]  # 1
    f_in = params["w1z"].shape[0] - h1

    # Common lane width (K dimension) of the packed weight blob.
    kpad = max(f_in, h1, h2, l1)

    # Static, 16-row aligned offsets inside the packed blob (bf16 tiles are 16 sublanes).
    o1 = 0
    o2 = o1 + _round_up(2 * h1, 16)
    o3 = o2 + _round_up(2 * h2, 16)
    o4 = o3 + _round_up(l1, 16)
    rows = o4 + _round_up(out_dim, 16)

    def pad2(a, r, c):
        return jnp.pad(a, ((0, r - a.shape[0]), (0, c - a.shape[1])))

    # x-part only (h-part multiplies H=0 and is dead); z-gate slabs negated.
    w1 = jnp.concatenate([-params["w1z"][:f_in], params["w1h"][:f_in]], axis=1).T  # (2h1,f_in)
    w2 = jnp.concatenate([-params["w2z"][:h1], params["w2h"][:h1]], axis=1).T      # (2h2,h1)
    w3 = params["wl1"].T                                                           # (l1,h2)
    w4 = params["wl2"].T                                                           # (out,l1)
    w_blob = jnp.concatenate([
        pad2(w1, o2 - o1, kpad),
        pad2(w2, o3 - o2, kpad),
        pad2(w3, o4 - o3, kpad),
        pad2(w4, rows - o4, kpad),
    ], axis=0).astype(matmul_dtype)

    b1 = jnp.concatenate([-params["b1z"], params["b1h"]], axis=1).T   # (2h1, 1)
    b2 = jnp.concatenate([-params["b2z"], params["b2h"]], axis=1).T   # (2h2, 1)
    b3 = params["bl1"].T                                              # (l1, 1)
    b4 = params["bl2"].T                                              # (out, 1)
    b_blob = jnp.concatenate([
        pad2(b1, o2 - o1, 1),
        pad2(b2, o3 - o2, 1),
        pad2(b3, o4 - o3, 1),
        pad2(b4, rows - o4, 1),
    ], axis=0).astype(jnp.float32)

    return {
        "w_blob": w_blob,
        "b_blob": b_blob,
        "matmul_dtype": matmul_dtype,
        "dims": dict(f_in=f_in, h1=h1, h2=h2, l1=l1, out_dim=out_dim,
                     kpad=kpad, o2=o2, o3=o3, o4=o4, rows=rows),
    }


# ------------------------------- Wrapper ----------------------------------- #

def enhanced_recurrent_gcn(packed, x, edge_index=None, edge_weight=None, *,
                           tile_n=None, gate_dtype=None, vmem_limit_bytes=None,
                           diffusion_k=1):
    """Forward pass of EnhancedRecurrentGCN as one fused Pallas kernel.

    `packed` comes from pack_params() (done once at load time).  x is (N, node_features).
    edge_index / edge_weight are accepted for signature parity only (DCRNN K=1 -> unused).
    """
    # The fusion is only valid for DCRNN with K=1 (no diffusion term => edges unused).
    assert diffusion_k == 1, "fused kernel assumes DCRNN filter size K == 1"
    del edge_index, edge_weight

    d = packed["dims"]
    mm_dtype = packed["matmul_dtype"]
    n, f_in = x.shape
    assert f_in == d["f_in"], "node_features mismatch vs packed parameters"

    if gate_dtype is None:
        gate_dtype = _default_gate_dtype(mm_dtype)

    # ---- node tiling: lane-pad N, pick tile size --------------------------------
    n_pad0 = _round_up(max(n, 1), 128)          # lane-dense blocks/output everywhere
    if tile_n is None:
        if n_pad0 <= 1024:
            tile_n = n_pad0                      # overhead-bound regime: one grid step
        else:
            # >= 2 grid steps (both v7x TensorCores get work) but keep tiles large;
            # 8192 nodes/step ~ a few MiB of f32 intermediates -> fits scoped VMEM.
            tile_n = min(8192, _round_up(pl.cdiv(n_pad0, 2), 128))
    tile_n = _round_up(tile_n, 128)
    n_pad = _round_up(n_pad0, tile_n)
    grid = n_pad // tile_n

    # Raise the scoped-VMEM limit only when large tiles actually need it (v5e default is
    # 16 MiB, v6e/v7x 32 MiB); 48 MiB leaves headroom below v7x's 64 MiB physical VMEM.
    if vmem_limit_bytes is None and tile_n >= 4096:
        vmem_limit_bytes = 48 << 20

    # Node-on-lanes input: x^T, lanes zero-padded to n_pad.  NO feature-row padding.
    # TODO(synk): for a pure-inference serving path, accept x already as (f_in, N) to
    # avoid the per-call transpose/cast round trip entirely.
    x_t = jnp.pad(x.astype(mm_dtype).T, ((0, 0), (0, n_pad - n)))

    kernel = functools.partial(_fused_kernel,
                               d["h1"], d["h2"], d["l1"], f_in,
                               d["o2"], d["o3"], d["o4"], mm_dtype, gate_dtype)

    out_row = pl.pallas_call(
        kernel,
        out_shape=jax.ShapeDtypeStruct((1, n_pad), jnp.float32),
        grid=(grid,),
        in_specs=[
            pl.BlockSpec((f_in, tile_n), lambda i: (0, i)),       # node tile of x^T
            pl.BlockSpec((d["rows"], d["kpad"]), lambda i: (0, 0)),  # packed weights
            pl.BlockSpec((d["rows"], 1), lambda i: (0, 0)),          # packed biases
        ],
        out_specs=pl.BlockSpec((1, tile_n), lambda i: (0, i)),    # lane-dense output row
        compiler_params=pltpu.CompilerParams(
            dimension_semantics=("parallel",),
            vmem_limit_bytes=vmem_limit_bytes),
    )(x_t, packed["w_blob"], packed["b_blob"])

    # Module returns (N, 1); drop lane padding and reshape.
    return out_row[0, :n].reshape(n, 1)


# --------------------------- Parameter init -------------------------------- #

def init_params(key, node_features, hidden_dim=32):
    h1 = hidden_dim
    h2 = hidden_dim // 2
    keys = jax.random.split(key, 16)

    def dconv_w(k, cin, cout):
        # torch DConv weight has shape (2, K=1, cin, cout); with K=1 the forward
        # is T @ W[0,0] + T @ W[1,0] + b, so fold the two slabs into one matrix.
        w = 0.1 * jax.random.normal(k, (2, 1, cin, cout), jnp.float32)
        return w[0, 0] + w[1, 0]

    def vec(k, dim):
        return 0.1 * jax.random.normal(k, (1, dim), jnp.float32)

    params = {
        # recurrent1: DCRNN(node_features, hidden_dim, K=1)
        "w1z": dconv_w(keys[0], node_features + h1, h1), "b1z": vec(keys[1], h1),
        "w1r": dconv_w(keys[2], node_features + h1, h1), "b1r": vec(keys[3], h1),
        "w1h": dconv_w(keys[4], node_features + h1, h1), "b1h": vec(keys[5], h1),
        # recurrent2: DCRNN(hidden_dim, hidden_dim // 2, K=1)
        "w2z": dconv_w(keys[6], h1 + h2, h2), "b2z": vec(keys[7], h2),
        "w2r": dconv_w(keys[8], h1 + h2, h2), "b2r": vec(keys[9], h2),
        "w2h": dconv_w(keys[10], h1 + h2, h2), "b2h": vec(keys[11], h2),
        # linear1: Linear(hidden_dim // 2, 16)  (stored as (in, out))
        "wl1": 0.1 * jax.random.normal(keys[12], (h2, 16), jnp.float32),
        "bl1": vec(keys[13], 16),
        # linear2: Linear(16, 1)
        "wl2": 0.1 * jax.random.normal(keys[14], (16, 1), jnp.float32),
        "bl2": vec(keys[15], 1),
    }
    return params


# ---------------------- Pure-JAX reference (full math) --------------------- #

def reference_forward(params, x):
    """Untrimmed reference: full GRU-style cell (r-gate, h-part weights, H=0)."""
    def cell(x_in, wz, bz, wr, br, wh, bh):
        h0 = jnp.zeros((x_in.shape[0], wz.shape[1]), jnp.float32)
        cat = jnp.concatenate([x_in, h0], axis=1)
        z = jax.nn.sigmoid(cat @ wz + bz)
        r = jax.nn.sigmoid(cat @ wr + br)
        cat2 = jnp.concatenate([x_in, h0 * r], axis=1)
        h_tilde = jnp.tanh(cat2 @ wh + bh)
        return z * h0 + (1.0 - z) * h_tilde

    h = jax.nn.relu(cell(x, params["w1z"], params["b1z"], params["w1r"],
                         params["b1r"], params["w1h"], params["b1h"]))
    h = jax.nn.relu(cell(h, params["w2z"], params["b2z"], params["w2r"],
                         params["b2r"], params["w2h"], params["b2h"]))
    h = jax.nn.relu(h @ params["wl1"] + params["bl1"])
    return h @ params["wl2"] + params["bl2"]


# ---------------------------------- Main ------------------------------------ #

if __name__ == "__main__":
    NUM_NODES = 16        # graph nodes (e.g. counties)
    NODE_FEATURES = 4     # lags
    HIDDEN_DIM = 32

    key = jax.random.PRNGKey(0)
    k_x, k_p, k_e = jax.random.split(key, 3)

    x = jax.random.normal(k_x, (NUM_NODES, NODE_FEATURES), jnp.float32)
    # Graph inputs (present for signature parity; unused because DCRNN K=1).
    num_edges = 32
    edge_index = jax.random.randint(k_e, (2, num_edges), 0, NUM_NODES, jnp.int32)
    edge_weight = jnp.abs(jax.random.normal(k_e, (num_edges,), jnp.float32))

    params = init_params(k_p, NODE_FEATURES, HIDDEN_DIM)
    ref = reference_forward(params, x)

    # Exact-precision path (f32 MXU inputs + f32 gate math): matches the reference closely.
    packed_f32 = pack_params(params, matmul_dtype=jnp.float32)
    out_f32 = enhanced_recurrent_gcn(packed_f32, x, edge_index, edge_weight)
    out_f32 = jax.block_until_ready(out_f32)
    assert out_f32.shape == (NUM_NODES, 1)
    assert jnp.allclose(out_f32, ref, rtol=1e-3, atol=1e-3), "f32 kernel mismatch vs reference"

    # Default performance path: bf16 MXU inputs, bf16 gate math on v6e/v7x (f32 on v5e),
    # f32 accumulation.  Weights packed once; forward jitted (packing outside the jit).
    packed = pack_params(params)
    fwd = jax.jit(functools.partial(enhanced_recurrent_gcn, packed))
    out = jax.block_until_ready(fwd(x, edge_index, edge_weight))
    assert out.shape == (NUM_NODES, 1)
    assert jnp.allclose(out, ref, rtol=5e-2, atol=1e-2), "bf16 kernel mismatch vs reference"

    print("KERNEL_OK")
</pallas_src>

<mosaic_0001>
module attributes {stable_mosaic.version = 11 : i64} {
  func.func @_fused_kernel(%arg0: i32, %arg1: memref<4x128xf32, #tpu.memory_space<vmem>>, %arg2: memref<128x32xf32, #tpu.memory_space<vmem>>, %arg3: memref<128x1xf32, #tpu.memory_space<vmem>>, %arg4: memref<1x128xf32, #tpu.memory_space<vmem>>) attributes {dimension_semantics = [#tpu.dimension_semantics<parallel>], iteration_bounds = array<i64: 1>, scalar_prefetch = 0 : i64, scratch_operands = 0 : i64, tpu.core_type = #tpu.core_type<tc>, window_params = [{transform_indices = @transform_0, window_bounds = array<i64: 4, 128>}, {pipeline_mode = #tpu.pipeline_mode<synchronous>, transform_indices = @transform_1, window_bounds = array<i64: 128, 32>}, {pipeline_mode = #tpu.pipeline_mode<synchronous>, transform_indices = @transform_2, window_bounds = array<i64: 128, 1>}, {transform_indices = @transform_3, window_bounds = array<i64: 1, 128>}]} {
    %c0 = arith.constant 0 : index
    %c0_0 = arith.constant 0 : index
    %0 = vector.load %arg1[%c0, %c0_0] : memref<4x128xf32, #tpu.memory_space<vmem>>, vector<4x128xf32>
    %c0_1 = arith.constant 0 : index
    %c0_2 = arith.constant 0 : index
    %1 = vector.load %arg2[%c0_1, %c0_2] : memref<128x32xf32, #tpu.memory_space<vmem>>, vector<128x32xf32>
    %c0_3 = arith.constant 0 : index
    %c0_4 = arith.constant 0 : index
    %2 = vector.load %arg3[%c0_3, %c0_4] : memref<128x1xf32, #tpu.memory_space<vmem>>, vector<128x1xf32>
    %3 = vector.extract_strided_slice %1 {offsets = [0, 0], sizes = [64, 4], strides = [1, 1]} : vector<128x32xf32> to vector<64x4xf32>
    %cst = arith.constant dense<0.000000e+00> : vector<64x128xf32>
    %4 = tpu.matmul %3, %0, %cst {dimension_numbers = #tpu.dot_dimension_numbers<[1], [0], [0], [1], [0, 0, 1, 1], [], []>} : vector<64x4xf32>, vector<4x128xf32>, vector<64x128xf32> -> vector<64x128xf32>
    %5 = vector.extract_strided_slice %2 {offsets = [0, 0], sizes = [64, 1], strides = [1, 1]} : vector<128x1xf32> to vector<64x1xf32>
    %6 = vector.broadcast %5 : vector<64x1xf32> to vector<64x128xf32>
    %7 = arith.addf %4, %6 : vector<64x128xf32>
    %8 = vector.extract_strided_slice %7 {offsets = [0, 0], sizes = [32, 128], strides = [1, 1]} : vector<64x128xf32> to vector<32x128xf32>
    %9 = arith.negf %8 : vector<32x128xf32>
    %10 = math.exp %9 : vector<32x128xf32>
    %cst_5 = arith.constant 1.000000e+00 : f32
    %11 = vector.broadcast %cst_5 : f32 to vector<32x128xf32>
    %12 = arith.addf %11, %10 : vector<32x128xf32>
    %13 = arith.divf %11, %12 : vector<32x128xf32>
    %14 = vector.extract_strided_slice %7 {offsets = [32, 0], sizes = [32, 128], strides = [1, 1]} : vector<64x128xf32> to vector<32x128xf32>
    %15 = math.tanh %14 : vector<32x128xf32>
    %16 = arith.mulf %13, %15 : vector<32x128xf32>
    %cst_6 = arith.constant 0.000000e+00 : f32
    %17 = vector.broadcast %cst_6 : f32 to vector<32x128xf32>
    %18 = arith.maximumf %16, %17 : vector<32x128xf32>
    %19 = vector.extract_strided_slice %1 {offsets = [64, 0], sizes = [32, 32], strides = [1, 1]} : vector<128x32xf32> to vector<32x32xf32>
    %cst_7 = arith.constant dense<0.000000e+00> : vector<32x128xf32>
    %20 = tpu.matmul %19, %18, %cst_7 {dimension_numbers = #tpu.dot_dimension_numbers<[1], [0], [0], [1], [0, 0, 1, 1], [], []>} : vector<32x32xf32>, vector<32x128xf32>, vector<32x128xf32> -> vector<32x128xf32>
    %21 = vector.extract_strided_slice %2 {offsets = [64, 0], sizes = [32, 1], strides = [1, 1]} : vector<128x1xf32> to vector<32x1xf32>
    %22 = vector.broadcast %21 : vector<32x1xf32> to vector<32x128xf32>
    %23 = arith.addf %20, %22 : vector<32x128xf32>
    %24 = vector.extract_strided_slice %23 {offsets = [0, 0], sizes = [16, 128], strides = [1, 1]} : vector<32x128xf32> to vector<16x128xf32>
    %25 = arith.negf %24 : vector<16x128xf32>
    %26 = math.exp %25 : vector<16x128xf32>
    %cst_8 = arith.constant 1.000000e+00 : f32
    %27 = vector.broadcast %cst_8 : f32 to vector<16x128xf32>
    %28 = arith.addf %27, %26 : vector<16x128xf32>
    %29 = arith.divf %27, %28 : vector<16x128xf32>
    %30 = vector.extract_strided_slice %23 {offsets = [16, 0], sizes = [16, 128], strides = [1, 1]} : vector<32x128xf32> to vector<16x128xf32>
    %31 = math.tanh %30 : vector<16x128xf32>
    %32 = arith.mulf %29, %31 : vector<16x128xf32>
    %cst_9 = arith.constant 0.000000e+00 : f32
    %33 = vector.broadcast %cst_9 : f32 to vector<16x128xf32>
    %34 = arith.maximumf %32, %33 : vector<16x128xf32>
    %35 = vector.extract_strided_slice %1 {offsets = [96, 0], sizes = [16, 16], strides = [1, 1]} : vector<128x32xf32> to vector<16x16xf32>
    %cst_10 = arith.constant dense<0.000000e+00> : vector<16x128xf32>
    %36 = tpu.matmul %35, %34, %cst_10 {dimension_numbers = #tpu.dot_dimension_numbers<[1], [0], [0], [1], [0, 0, 1, 1], [], []>} : vector<16x16xf32>, vector<16x128xf32>, vector<16x128xf32> -> vector<16x128xf32>
    %37 = vector.extract_strided_slice %2 {offsets = [96, 0], sizes = [16, 1], strides = [1, 1]} : vector<128x1xf32> to vector<16x1xf32>
    %38 = vector.broadcast %37 : vector<16x1xf32> to vector<16x128xf32>
    %39 = arith.addf %36, %38 : vector<16x128xf32>
    %cst_11 = arith.constant 0.000000e+00 : f32
    %40 = vector.broadcast %cst_11 : f32 to vector<16x128xf32>
    %41 = arith.maximumf %39, %40 : vector<16x128xf32>
    %42 = vector.extract_strided_slice %1 {offsets = [112, 0], sizes = [16, 16], strides = [1, 1]} : vector<128x32xf32> to vector<16x16xf32>
    %cst_12 = arith.constant dense<0.000000e+00> : vector<16x128xf32>
    %43 = tpu.matmul %42, %41, %cst_12 {dimension_numbers = #tpu.dot_dimension_numbers<[1], [0], [0], [1], [0, 0, 1, 1], [], []>} : vector<16x16xf32>, vector<16x128xf32>, vector<16x128xf32> -> vector<16x128xf32>
    %44 = vector.extract_strided_slice %43 {offsets = [0, 0], sizes = [1, 128], strides = [1, 1]} : vector<16x128xf32> to vector<1x128xf32>
    %45 = vector.extract_strided_slice %2 {offsets = [112, 0], sizes = [1, 1], strides = [1, 1]} : vector<128x1xf32> to vector<1x1xf32>
    %46 = vector.broadcast %45 : vector<1x1xf32> to vector<1x128xf32>
    %47 = arith.addf %44, %46 : vector<1x128xf32>
    %c0_13 = arith.constant 0 : index
    %c0_14 = arith.constant 0 : index
    %48 = vector.load %arg4[%c0_13, %c0_14] : memref<1x128xf32, #tpu.memory_space<vmem>>, vector<1x128xf32>
    tpu.vector_store %arg4[%c0_13, %c0_14], %47 {strides = array<i32>} : memref<1x128xf32, #tpu.memory_space<vmem>>, vector<1x128xf32>,
    return
  }
  func.func @transform_0(%arg0: i32) -> (i32, i32) {
    %c0_i32 = arith.constant 0 : i32
    %c0_i32_0 = arith.constant 0 : i32
    return %c0_i32, %arg0 : i32, i32
  }
  func.func @transform_1(%arg0: i32) -> (i32, i32) {
    %c0_i32 = arith.constant 0 : i32
    %c0_i32_0 = arith.constant 0 : i32
    %c0_i32_1 = arith.constant 0 : i32
    return %c0_i32, %c0_i32_0 : i32, i32
  }
  func.func @transform_2(%arg0: i32) -> (i32, i32) {
    %c0_i32 = arith.constant 0 : i32
    %c0_i32_0 = arith.constant 0 : i32
    %c0_i32_1 = arith.constant 0 : i32
    return %c0_i32, %c0_i32_0 : i32, i32
  }
  func.func @transform_3(%arg0: i32) -> (i32, i32) {
    %c0_i32 = arith.constant 0 : i32
    %c0_i32_0 = arith.constant 0 : i32
    return %c0_i32, %arg0 : i32, i32
  }
}

</mosaic_0001>

<bundles_post_ra>
// kernel: tpu_custom_call.1
= control target key start
LH: loop header
LB: loop body
LE: loop exit
PB: predicated region body
PF: predicated region fallthrough
CT: control target
= control target key end

     0   :  { %vm112_vm0 = vcmask 1043456   ;;  %vm87_vm1 = vcmask 31744   ;;  %v758_v4 = vmov 0   ;;  %s904_s0 = inlined_call_operand.vmem [shape: f32[4,128], index: 0, kind: input, shape index: {}]   ;;  %s905_s1 = inlined_call_operand.vmem [shape: f32[128,32], index: 1, kind: input, shape index: {}]   ;;  %s906_s2 = inlined_call_operand.vmem [shape: f32[128,1], index: 2, kind: input, shape index: {}]   ;;  %s907_s3 = inlined_call_operand.hbm [shape: f32[1,128], index: 3, kind: output, shape index: {}]  }
   0x1   :  { %v15_v0 = vld [vmem:[%s904_s0] sm:$0xf]  ;;  %v17_v2 = vld [vmem:[%s905_s1 + $0x8] sm:$0xff]  ;;  %v18_v3 = vld [vmem:[%s905_s1 + $0x10] sm:$0xff]  ;;  %696 = vset.pattern.permute.xlu0 %v758_v4  ;;  %697 = vset.pattern.permute.xlu1 %v758_v4 }
   0x2   :  { %v16_v1 = vld [vmem:[%s905_s1] sm:$0xff]  ;;  %636 = vmatprep.subr.msk.mxu0 %vm112_vm0, %v15_v0  ;;  %v34_v6 = vld [vmem:[%s906_s2 + $0x10] sm:$0xff]  ;;  %v19_v7 = vld [vmem:[%s905_s1 + $0x18] sm:$0xff] }
   0x3   :  { %638 = vmatprep.mubr.msk.f32.mxu0 %vm87_vm1, %v16_v1  ;;  %637 = vmatpush3.msk.msra.mxu0 %vm112_vm0, %v15_v0  ;;  %v32_v5 = vld [vmem:[%s906_s2] sm:$0xff]  ;;  %v33_v9 = vld [vmem:[%s906_s2 + $0x8] sm:$0xff]  ;;  %v35_v10 = vld [vmem:[%s906_s2 + $0x18] sm:$0xff] }
   0x4   :  { %639 = vmatmul.mubr.msk.f32.vlgmr.msra.gmra.mrb[0].mxu0 %vm87_vm1, %v17_v2  ;;  %49 = vperm.xlu0 %696, %v32_v5   ;;  %v20_v8 = vld [vmem:[%s905_s1 + $0x20] sm:$0xff]  ;;  %v21_v11 = vld [vmem:[%s905_s1 + $0x28] sm:$0xff] }
   0x5   :  { %641 = vmatprep.mubr.msk.f32.mxu0 %vm87_vm1, %v18_v3  ;;  %59 = vperm.xlu1 %697, %v34_v6  }
   0x8   :  { %642 = vmatmul.mubr.msk.f32.gmra.mrb[2].mxu0 %vm87_vm1, %v19_v7  ;;  %54 = vperm.xlu0 %696, %v33_v9  }
   0x9   :  { %644 = vmatprep.mubr.msk.f32.mxu0 %vm87_vm1, %v20_v8 }
   0xa   :  { %8 = vsyncpa [#allocation3], 0  ;;  %v22_v12 = vld [vmem:[%s905_s1 + $0x30] sm:$0xff]  ;;  %v36_v13 = vld [vmem:[%s906_s2 + $0x20] sm:$0xff]  ;;  %64 = vperm.xlu1 %697, %v35_v10   ;;  %vm277_vm2 = vcmask 261120   ;;  %vm403_vm3 = vcmask 130048  }
   0xb   :  { %v37_v14 = vld [vmem:[%s906_s2 + $0x28] sm:$0xff]  ;;  %v23_v15 = vld [vmem:[%s905_s1 + $0x38] sm:$0xff]  ;;  %v38_v16 = vld [vmem:[%s906_s2 + $0x30] sm:$0xff]  ;;  %s759_s19 = smov [#allocation2]  }
   0xc   :  { %645 = vmatmul.mubr.msk.f32.gmra.mrb[4].mxu0 %vm87_vm1, %v21_v11  ;;  %69 = vperm.xlu0 %696, %v36_v13   ;;  %v39_v17 = vld [vmem:[%s906_s2 + $0x38] sm:$0xff]  ;;  %v40_v18 = vld [vmem:[%s906_s2 + $0x40] sm:$0xff]  ;;  %v41_v19 = vld [vmem:[%s906_s2 + $0x48] sm:$0xff]  ;;  %s580_s0 = sshll.u32 %s759_s19, 4  ;;  %s581_s0 = int_to_ptr.vmem [resolvable:$true] %s580_s0 }
   0xd   :  { %647 = vmatprep.mubr.msk.f32.mxu0 %vm87_vm1, %v22_v12  ;;  %v42_v20 = vld [vmem:[%s906_s2 + $0x50] sm:$0xff]  ;;  %v43_v21 = vld [vmem:[%s906_s2 + $0x58] sm:$0xff]  ;;  %v44_v22 = vld [vmem:[%s906_s2 + $0x60] sm:$0xff]  ;;  %s734_s20 = scalar_lea.vmem %s581_s0, 16  ;;  %s738_s21 = scalar_lea.vmem %s581_s0, 32 }
   0xe   :  { %74 = vperm.xlu1 %697, %v37_v14   ;;  %v45_v23 = vld [vmem:[%s906_s2 + $0x68] sm:$0xff]  ;;  %v46_v24 = vld [vmem:[%s906_s2 + $0x70] sm:$0xff]  ;;  %v24_v25 = vld [vmem:[%s905_s1 + $0x40] sm:$0xff]  ;;  %p735_p0 = scmp.ne.s32.totalorder %s581_s0, %s734_s20  ;;  %p739_p1 = scmp.lt.s32.totalorder %s581_s0, %s581_s0 }
   0xf   :  { %658 = vmatprep.mubr.msk.f32.mxu1 %vm277_vm2, %v24_v25  ;;  %p740_p2 = scmp.lt.s32.totalorder %s738_s21, %s734_s20 }
  0x10   :  { %648 = vmatmul.mubr.msk.f32.gmra.mrb[6].mxu0 %vm87_vm1, %v23_v15  ;;  %79 = vperm.xlu0 %696, %v38_v16   ;;  %v25_v16 = vld [vmem:[%s905_s1 + $0x48] sm:$0xff] }
  0x11   :  { %p741_p3 = por %p740_p2, %p739_p1 }
  0x12   :  { %84 = vperm.xlu1 %697, %v39_v17   ;;  %v26_v17 = vld [vmem:[%s905_s1 + $0x50] sm:$0xff] }
  0x13   :  { %p742_p4 = pnand %p741_p3, %p735_p0 }
  0x14   :  { %259 = vperm.xlu0 %696, %v40_v18   ;;  %v27_v18 = vld [vmem:[%s905_s1 + $0x58] sm:$0xff] }
  0x16   :  { %264 = vperm.xlu1 %697, %v41_v19   ;;  %v28_v19 = vld [vmem:[%s905_s1 + $0x60] sm:$0xff] }
  0x18   :  { %269 = vperm.xlu0 %696, %v42_v20  }
  0x1a   :  { %274 = vperm.xlu1 %697, %v43_v21  }
  0x1c   :  { %395 = vperm.xlu0 %696, %v44_v22  }
  0x1e   :  { %400 = vperm.xlu1 %697, %v45_v23  }
  0x20   :  { %569 = vperm.xlu0 %696, %v46_v24  }
  0x83   :  { %v50_v26 = vpop.permute.xlu0 %49 }
  0x84   :  { %v60_v27 = vpop.permute.xlu1 %59 }
  0x87   :  { %v55_v28 = vpop.permute.xlu0 %54 }
  0x89   :  { %v65_v33 = vpop.permute.xlu1 %64 }
  0x8b   :  { %v70_v45 = vpop.permute.xlu0 %69 }
  0x8d   :  { %v75_v43 = vpop.permute.xlu1 %74 }
  0x8f   :  { %v80_v53 = vpop.permute.xlu0 %79 }
  0x91   :  { %v85_v51 = vpop.permute.xlu1 %84 }
  0x93   :  { %v260_v22 = vpop.permute.xlu0 %259 }
  0x95   :  { %v265_v20 = vpop.permute.xlu1 %264 }
  0xd7   :  { %v640_v29 = vpop.f32.mrb[0].mxu0 }
  0xd8   :  { %v188_v30 = vadd.f32 %v640_v29, %v55_v28  ;;  %v182_v31 = vpop.f32.mrb[1].mxu0 }
  0xd9   :  { %v183_v32 = vadd.f32 %v182_v31, %v50_v26  ;;  %v270_v31 = vpop.permute.xlu0 %269 }
  0xda   :  { %v598_v34 = vmul.f32 -1.442695, %v188_v30  ;;  %v275_v30 = vpop.permute.xlu1 %274 }
  0xdb   :  { %v597_v35 = vmul.f32 -1.442695, %v183_v32  ;;  %v643_v36 = vpop.f32.mrb[2].mxu0 }
  0xdc   :  { %698 = vpow2.f32 %v598_v34  ;;  %v198_v37 = vadd.f32 %v643_v36, %v65_v33  ;;  %v192_v38 = vpop.f32.mrb[3].mxu0 }
  0xdd   :  { %700 = vpow2.f32 %v597_v35  ;;  %v193_v39 = vadd.f32 %v192_v38, %v60_v27 }
  0xde   :  { %v600_v40 = vmul.f32 -1.442695, %v198_v37 }
  0xdf   :  { %v599_v41 = vmul.f32 -1.442695, %v193_v39  ;;  %v646_v42 = vpop.f32.mrb[4].mxu0 }
  0xe0   :  { %702 = vpow2.f32 %v600_v40  ;;  %v202_v44 = vpop.f32.mrb[5].mxu0  ;;  %v208_v46 = vadd.f32 %v646_v42, %v75_v43 }
  0xe1   :  { %704 = vpow2.f32 %v599_v41  ;;  %v203_v48 = vadd.f32 %v202_v44, %v70_v45 }
  0xe2   :  { %706 = vtanh.f32 %v208_v46 }
  0xe3   :  { %v649_v47 = vpop.f32.mrb[6].mxu0  ;;  %708 = vtanh.f32 %v203_v48  ;;  %v30_v48 = vld [vmem:[%s905_s1 + $0x70] sm:$0xff] }
  0xe4   :  { %v212_v49 = vpop.f32.mrb[7].mxu0  ;;  %v218_v55 = vadd.f32 %v649_v47, %v85_v51  ;;  %v29_v47 = vld [vmem:[%s905_s1 + $0x68] sm:$0xff]  ;;  %675 = vmatprep.mubr.msk.f32.mxu0 %vm403_vm3, %v30_v48  ;;  %v396_v51 = vpop.permute.xlu0 %395 }
  0xe5   :  { %v213_v57 = vadd.f32 %v212_v49, %v80_v53  ;;  %v401_v49 = vpop.permute.xlu1 %400 }
  0xe6   :  { %v699_v50 = vpop.eup %698 }
  0xe7   :  { %v701_v52 = vpop.eup %700  ;;  %v234_v54 = vadd.f32 1.0, %v699_v50 }
  0xe8   :  { %v233_v56 = vadd.f32 1.0, %v701_v52 }
  0xe9   :  { %710 = vrcp.f32 %v234_v54 }
  0xea   :  { %v703_v58 = vpop.eup %702  ;;  %712 = vrcp.f32 %v233_v56 }
  0xeb   :  { %v705_v59 = vpop.eup %704  ;;  %v236_v60 = vadd.f32 1.0, %v703_v58  ;;  %714 = vtanh.f32 %v218_v55  ;;  %v31_v58 = vld [vmem:[%s905_s1 + $0x78] sm:$0xff] }
  0xec   :  { %v235_v61 = vadd.f32 1.0, %v705_v59  ;;  %716 = vtanh.f32 %v213_v57  ;;  %v707_v62 = vpop.eup %706 }
  0xed   :  { %718 = vrcp.f32 %v236_v60  ;;  %v709_v63 = vpop.eup %708  ;;  %v570_v60 = vpop.permute.xlu0 %569 }
  0xee   :  { %720 = vrcp.f32 %v235_v61 }
  0xf3   :  { %v711_v0 = vpop.eup %710 }
  0xf4   :  { %v713_v1 = vpop.eup %712  ;;  %v250_v2 = vmul.f32 %v711_v0, %v707_v62 }
  0xf5   :  { %v715_v3 = vpop.eup %714  ;;  %v249_v4 = vmul.f32 %v713_v1, %v709_v63 }
  0xf6   :  { %v717_v5 = vpop.eup %716  ;;  %v254_v6 = vmax.f32 %v250_v2, 0.0 }
  0xf7   :  { %v719_v7 = vpop.eup %718  ;;  %v253_v8 = vmax.f32 %v249_v4, 0.0 }
  0xf8   :  { %v721_v9 = vpop.eup %720  ;;  %v252_v10 = vmul.f32 %v719_v7, %v715_v3 }
  0xf9   :  { %v678_v11 = vpack.c.bf16 %v254_v6, %v253_v8  ;;  %v251_v12 = vmul.f32 %v721_v9, %v717_v5 }
  0xfa   :  { %v256_v13 = vmax.f32 %v252_v10, 0.0 }
  0xfb   :  { %679 = vmatprep.subr.bf16.mxu1 %v678_v11  ;;  %v255_v14 = vmax.f32 %v251_v12, 0.0 }
  0xfc   :  { %681 = vmatpush3.bf16.msra.mxu1 %v678_v11 }
  0xfd   :  { %v682_v15 = vpack.c.bf16 %v256_v13, %v255_v14 }
  0xff   :  { %683 = vmatprep.subr.bf16.mxu1 %v682_v15 }
 0x100   :  { %685 = vmatpush3.bf16.msra.mxu1 %v682_v15 }
 0x103   :  { %659 = vmatmul.mubr.msk.f32.vlgmr.msra.gmra.mrb[0].mxu1 %vm277_vm2, %v25_v16 }
 0x104   :  { %661 = vmatprep.mubr.msk.f32.mxu1 %vm277_vm2, %v26_v17 }
 0x107   :  { %662 = vmatmul.mubr.msk.f32.gmra.mrb[2].mxu1 %vm277_vm2, %v27_v18 }
 0x108   :  { %668 = vmatprep.mubr.msk.f32.mxu1 %vm403_vm3, %v28_v19 }
 0x1d6   :  { %v660_v21 = vpop.f32.mrb[0].mxu1 }
 0x1d7   :  { %v362_v23 = vadd.f32 %v660_v21, %v265_v20  ;;  %v356_v24 = vpop.f32.mrb[1].mxu1 }
 0x1d8   :  { %v357_v25 = vadd.f32 %v356_v24, %v260_v22 }
 0x1d9   :  { %v606_v26 = vmul.f32 -1.442695, %v362_v23 }
 0x1da   :  { %v605_v27 = vmul.f32 -1.442695, %v357_v25  ;;  %v663_v28 = vpop.f32.mrb[2].mxu1 }
 0x1db   :  { %722 = vpow2.f32 %v606_v26  ;;  %v366_v29 = vpop.f32.mrb[3].mxu1  ;;  %v372_v32 = vadd.f32 %v663_v28, %v275_v30 }
 0x1dc   :  { %724 = vpow2.f32 %v605_v27  ;;  %v367_v33 = vadd.f32 %v366_v29, %v270_v31 }
 0x1dd   :  { %726 = vtanh.f32 %v372_v32 }
 0x1de   :  { %728 = vtanh.f32 %v367_v33 }
 0x1e5   :  { %v723_v34 = vpop.eup %722 }
 0x1e6   :  { %v725_v35 = vpop.eup %724  ;;  %v382_v36 = vadd.f32 1.0, %v723_v34 }
 0x1e7   :  { %v381_v37 = vadd.f32 1.0, %v725_v35  ;;  %v727_v38 = vpop.eup %726 }
 0x1e8   :  { %730 = vrcp.f32 %v382_v36  ;;  %v729_v39 = vpop.eup %728 }
 0x1e9   :  { %732 = vrcp.f32 %v381_v37 }
 0x1f2   :  { %v731_v40 = vpop.eup %730 }
 0x1f3   :  { %v733_v41 = vpop.eup %732  ;;  %v390_v42 = vmul.f32 %v731_v40, %v727_v38 }
 0x1f4   :  { %v389_v43 = vmul.f32 %v733_v41, %v729_v39 }
 0x1f5   :  { %v392_v44 = vmax.f32 %v390_v42, 0.0 }
 0x1f6   :  { %v391_v45 = vmax.f32 %v389_v43, 0.0 }
 0x1f8   :  { %v686_v46 = vpack.c.bf16 %v392_v44, %v391_v45 }
 0x1fa   :  { %687 = vmatprep.subr.bf16.mxu1 %v686_v46 }
 0x1fb   :  { %689 = vmatpush3.bf16.msra.mxu1 %v686_v46 }
 0x1fe   :  { %669 = vmatmul.mubr.msk.f32.vlgmr.msra.gmra.mrb[4].mxu1 %vm403_vm3, %v29_v47 }
 0x2d1   :  { %v670_v50 = vpop.f32.mrb[4].mxu1 }
 0x2d2   :  { %v482_v52 = vadd.f32 %v670_v50, %v401_v49  ;;  %v476_v53 = vpop.f32.mrb[5].mxu1 }
 0x2d3   :  { %v477_v54 = vadd.f32 %v476_v53, %v396_v51 }
 0x2d4   :  { %v486_v55 = vmax.f32 %v482_v52, 0.0 }
 0x2d5   :  { %v485_v56 = vmax.f32 %v477_v54, 0.0 }
 0x2d7   :  { %v690_v57 = vpack.c.bf16 %v486_v55, %v485_v56 }
 0x2d9   :  { %691 = vmatprep.subr.bf16.mxu0 %v690_v57 }
 0x2da   :  { %693 = vmatpush3.bf16.msra.mxu0 %v690_v57 }
 0x2dd   :  { %676 = vmatmul.mubr.msk.f32.vlgmr.msra.gmra.mrb[8].mxu0 %vm403_vm3, %v31_v58 }
 0x3b0   :  { %v677_v59 = vpop.f32.mrb[8].mxu0 }
 0x3b1   :  { %v559_v61 = vpop.f32.mrb[9].mxu0 }
 0x3b2   :  { %v572_v62 = vadd.f32 %v570_v60, %v559_v61 }
 0x3b4   :  { %573 = vst [vmem:[#allocation2] sm:$0x1] %v572_v62 }
 0x3b5   :  { %745 = shalt.err (!%p742_p4)
}
 0x3b6   :  { %s746_s23 = scalar_lea.hbm %s907_s3, 16 }
 0x3b7   :  { %p747_p5 = scmp.ne.s32.totalorder %s907_s3, %s746_s23  ;;  %p750_p6 = scmp.lt.u32.totalorder %s746_s23, %s907_s3 }
 0x3b9   :  { %p752_p7 = pnand %p750_p6, %p747_p5 }
 0x3bb   :  { %755 = shalt.err (!%p752_p7)
}
 0x3bc   :  { %583 = dma.vmem_to_hbm [thread:$0]  %s581_s0, 16, %s907_s3, [#allocation3]  }
 0x3bd   :  { %756 = dma.done.wait [#allocation3], 16  }
 0x3be   :  { %757 = vsyncadd [#allocation3], 4294967280 }
 0x3bf   :  { %587 = vsyncpa [#allocation3], 1 }

</bundles_post_ra>
